<compile_context>
chip_gen: v7x
topology: tpu7x:2x2x1
jax: 0.10.0
libtpu: 0.0.40
codegen_flags: <defaults>
</compile_context>

<pallas_src>
import jax
import jax.numpy as jnp
from jax import lax
from jax.experimental import pallas as pl
from jax.experimental.pallas import tpu as pltpu

LANE = 128
SUB = 8
MIN_TILE = LANE * SUB          # 1024 points

# Dynamic slab rows : 0..11 rott top-3x4 row-major | 12..14 xyz_dis
# Static  slab rows : 0..2 canonical | 3..5 _scaling | 6..9 rotation_base | 10 _opacity
# Output  slab rows : 0..2 xyz | 3..6 rotation | 7..9 scaling | 10 opacity | 11..16 cov
N_DYN_CH = 15
N_STAT_CH = 11
N_OUT_CH = 17

UNROLL = 2                     # partial unroll of the 8-sublane chunk loop


def _gaussian_kernel(dyn_ref, stat_ref, out_ref):
    ts = dyn_ref.shape[1]                       # sublane-groups in this tile
    n_chunks = ts // SUB

    def do_chunk(ci):
        s = ci * SUB
        if not isinstance(s, int):
            s = pl.multiple_of(s, SUB)

        # ---- load every channel exactly once: one dense [8,128] vreg each ----
        dyn = [dyn_ref[k, pl.ds(s, SUB), :] for k in range(N_DYN_CH)]
        sta = [stat_ref[k, pl.ds(s, SUB), :] for k in range(N_STAT_CH)]

        def st(k, v):
            out_ref[k, pl.ds(s, SUB), :] = v

        m00, m01, m02, m03 = dyn[0], dyn[1], dyn[2], dyn[3]
        m10, m11, m12, m13 = dyn[4], dyn[5], dyn[6], dyn[7]
        m20, m21, m22, m23 = dyn[8], dyn[9], dyn[10], dyn[11]
        dx, dy, dz = dyn[12], dyn[13], dyn[14]
        cx, cy, cz = sta[0], sta[1], sta[2]
        sl0, sl1, sl2 = sta[3], sta[4], sta[5]
        bw, bx, by, bz = sta[6], sta[7], sta[8], sta[9]
        op = sta[10]

        # ---- posed points: rott @ [canonical + dis, 1] (homogeneous w dropped) --
        px = cx + dx
        py = cy + dy
        pz = cz + dz
        st(0, m00 * px + m01 * py + m02 * pz + m03)
        st(1, m10 * px + m11 * py + m12 * pz + m13)
        st(2, m20 * px + m21 * py + m22 * pz + m23)

        # ---- matrix_to_quaternion (pytorch3d), unscaled candidates --------------
        # 1/(2*q_k) is a uniform positive scale on the selected candidate and cancels
        # in the rsqrt normalize below (which also feeds the covariance).
        t0 = jnp.maximum(1.0 + m00 + m11 + m22, 0.0)
        t1 = jnp.maximum(1.0 + m00 - m11 - m22, 0.0)
        t2 = jnp.maximum(1.0 - m00 + m11 - m22, 0.0)
        t3 = jnp.maximum(1.0 - m00 - m11 + m22, 0.0)
        maxv = jnp.maximum(jnp.maximum(t0, t1), jnp.maximum(t2, t3))
        c0 = t0 >= maxv                         # >= picks first candidate (argmax tie-break)
        c1 = t1 >= maxv
        c2 = t2 >= maxv

        def pick(a, b, c, d):                   # componentwise candidate select
            return jnp.where(c0, a, jnp.where(c1, b, jnp.where(c2, c, d)))

        aw = pick(t0, m21 - m12, m02 - m20, m10 - m01)
        ax = pick(m21 - m12, t1, m10 + m01, m02 + m20)
        ay = pick(m02 - m20, m10 + m01, t2, m12 + m21)
        az = pick(m10 - m01, m02 + m20, m12 + m21, t3)

        # ---- quaternion_multiply(quat, rotation_base) + standardize -------------
        ow = aw * bw - ax * bx - ay * by - az * bz
        ox = aw * bx + ax * bw + ay * bz - az * by
        oy = aw * by - ax * bz + ay * bw + az * bx
        oz = aw * bz + ax * by - ay * bx + az * bw
        neg = ow < 0.0
        ow = jnp.where(neg, -ow, ow)
        ox = jnp.where(neg, -ox, ox)
        oy = jnp.where(neg, -oy, oy)
        oz = jnp.where(neg, -oz, oz)

        # ---- get_rotation = F.normalize(_rotation): rsqrt on EUP ----------------
        nrm2 = ow * ow + ox * ox + oy * oy + oz * oz
        inv_n = lax.rsqrt(jnp.maximum(nrm2, 1e-24))
        r = ow * inv_n
        x = ox * inv_n
        y = oy * inv_n
        z = oz * inv_n
        st(3, r); st(4, x); st(5, y); st(6, z)

        # ---- get_scaling / get_opacity -------------------------------------------
        s0 = jnp.exp(sl0)
        s1 = jnp.exp(sl1)
        s2 = jnp.exp(sl2)
        st(7, s0); st(8, s1); st(9, s2)
        st(10, 0.5 * (jnp.tanh(0.5 * op) + 1.0))    # sigmoid via one EUP tanh

        # ---- covariance = strip_symmetric(L @ L.T), L = R(q) @ diag(s) ----------
        R00 = 1.0 - 2.0 * (y * y + z * z); R01 = 2.0 * (x * y - r * z); R02 = 2.0 * (x * z + r * y)
        R10 = 2.0 * (x * y + r * z); R11 = 1.0 - 2.0 * (x * x + z * z); R12 = 2.0 * (y * z - r * x)
        R20 = 2.0 * (x * z - r * y); R21 = 2.0 * (y * z + r * x); R22 = 1.0 - 2.0 * (x * x + y * y)
        L00, L01, L02 = R00 * s0, R01 * s1, R02 * s2
        L10, L11, L12 = R10 * s0, R11 * s1, R12 * s2
        L20, L21, L22 = R20 * s0, R21 * s1, R22 * s2
        st(11, L00 * L00 + L01 * L01 + L02 * L02)   # cov_xx
        st(12, L00 * L10 + L01 * L11 + L02 * L12)   # cov_xy
        st(13, L00 * L20 + L01 * L21 + L02 * L22)   # cov_xz
        st(14, L10 * L10 + L11 * L11 + L12 * L12)   # cov_yy
        st(15, L10 * L20 + L11 * L21 + L12 * L22)   # cov_yz
        st(16, L20 * L20 + L21 * L21 + L22 * L22)   # cov_zz

    n_main = (n_chunks // UNROLL) * UNROLL
    if n_chunks >= UNROLL:
        def body(oc, carry):
            base = oc * UNROLL
            for u in range(UNROLL):
                do_chunk(base + u)
            return carry
        lax.fori_loop(0, n_chunks // UNROLL, body, 0)
    for u in range(n_main, n_chunks):               # static tail (and tiny-tile case)
        do_chunk(u)


# ----------------------------------------------------------------------------------
# Host-side packing / tiling helpers
# ----------------------------------------------------------------------------------
def choose_tile(n, *, tile_n=32768, min_grid_steps=2):
    """Pick (tile, n_pad) with tile a multiple of 1024 and n_pad a multiple of tile."""
    n_units = max(1, pl.cdiv(n, MIN_TILE))                 # 1024-point units
    units_per_tile = max(1, min(tile_n // MIN_TILE, n_units))
    steps = pl.cdiv(n_units, units_per_tile)
    steps = max(steps, min(min_grid_steps, n_units))       # >=2 steps for v7x's 2 TCs
    units_per_tile = pl.cdiv(n_units, steps)
    tile = units_per_tile * MIN_TILE
    return tile, steps * tile


def _pack_slab(arrays, n_pad):
    """[N, C_i] arrays -> channel-major [sum(C_i), n_pad/128, 128] slab (one transpose)."""
    n = arrays[0].shape[0]
    slab = jnp.concatenate([jnp.asarray(a, jnp.float32) for a in arrays], axis=1)
    slab = jnp.pad(slab, ((0, n_pad - n), (0, 0)))
    return jnp.transpose(slab).reshape(slab.shape[1], n_pad // LANE, LANE)


def prepack_static(canonical, scaling_raw, rotation_base, opacity_raw, n_pad):
    """Pack the static Gaussian parameters ONCE (outside the per-frame hot path)."""
    return _pack_slab([canonical, scaling_raw, rotation_base, opacity_raw], n_pad)


def pack_dynamic(rott_flat, xyz_dis, n_pad):
    """Per-frame packing: top 3x4 of the rigid transform + xyz displacement."""
    return _pack_slab([rott_flat[:, :12], xyz_dis], n_pad)


def gaussian_scene_forward_packed(dyn_slab, stat_slab, *, tile):
    """Core kernel call: channel-major in, channel-major [17, n_pad/128, 128] out."""
    n_pad = dyn_slab.shape[1] * LANE
    assert n_pad % tile == 0
    ts = tile // LANE
    grid = (n_pad // tile,)
    return pl.pallas_call(
        _gaussian_kernel,
        out_shape=jax.ShapeDtypeStruct((N_OUT_CH, n_pad // LANE, LANE), jnp.float32),
        grid=grid,
        in_specs=[pl.BlockSpec((N_DYN_CH, ts, LANE), lambda i: (0, i, 0)),
                  pl.BlockSpec((N_STAT_CH, ts, LANE), lambda i: (0, i, 0))],
        out_specs=pl.BlockSpec((N_OUT_CH, ts, LANE), lambda i: (0, i, 0)),
        compiler_params=pltpu.CompilerParams(dimension_semantics=("parallel",)),
    )(dyn_slab, stat_slab)


def unpack_outputs(out_slab, n):
    """Test-only convenience: channel-major slab -> [N,C] views (not the hot path)."""
    out = out_slab.reshape(N_OUT_CH, -1)[:, :n]
    return (jnp.transpose(out[0:3]),      # xyz      [N,3]
            jnp.transpose(out[3:7]),      # rotation [N,4]
            jnp.transpose(out[7:10]),     # scaling  [N,3]
            jnp.transpose(out[10:11]),    # opacity  [N,1]
            jnp.transpose(out[11:17]))    # cov      [N,6]


def gaussian_scene_forward(rott_flat, canonical, xyz_dis, scaling_raw,
                           rotation_base, opacity_raw, *, tile_n=32768, min_grid_steps=2):
    """Convenience one-shot wrapper (training loops should pre-pack statics once)."""
    n = canonical.shape[0]
    tile, n_pad = choose_tile(n, tile_n=tile_n, min_grid_steps=min_grid_steps)
    stat = prepack_static(canonical, scaling_raw, rotation_base, opacity_raw, n_pad)
    dyn = pack_dynamic(rott_flat, xyz_dis, n_pad)
    out_slab = gaussian_scene_forward_packed(dyn, stat, tile=tile)
    return unpack_outputs(out_slab, n)


# ----------------------------------------------------------------------------------
# Pure-JAX reference (pytorch3d / 3DGS semantics) + synthetic inputs
# ----------------------------------------------------------------------------------
def _reference(rott_flat, canonical, xyz_dis, scaling_raw, rotation_base, opacity_raw):
    n = canonical.shape[0]
    T = rott_flat.reshape(n, 4, 4)
    p = jnp.concatenate([canonical + xyz_dis, jnp.ones((n, 1), jnp.float32)], -1)
    xyz = jnp.einsum('nij,nj->ni', T, p)[:, :3]
    m = T[:, :3, :3]
    m00, m01, m02 = m[:, 0, 0], m[:, 0, 1], m[:, 0, 2]
    m10, m11, m12 = m[:, 1, 0], m[:, 1, 1], m[:, 1, 2]
    m20, m21, m22 = m[:, 2, 0], m[:, 2, 1], m[:, 2, 2]
    q_abs = jnp.sqrt(jnp.maximum(jnp.stack(
        [1.0 + m00 + m11 + m22, 1.0 + m00 - m11 - m22,
         1.0 - m00 + m11 - m22, 1.0 - m00 - m11 + m22], -1), 0.0))
    cand = jnp.stack([
        jnp.stack([q_abs[:, 0] ** 2, m21 - m12, m02 - m20, m10 - m01], -1),
        jnp.stack([m21 - m12, q_abs[:, 1] ** 2, m10 + m01, m02 + m20], -1),
        jnp.stack([m02 - m20, m10 + m01, q_abs[:, 2] ** 2, m12 + m21], -1),
        jnp.stack([m10 - m01, m02 + m20, m12 + m21, q_abs[:, 3] ** 2], -1),
    ], 1) / (2.0 * jnp.maximum(q_abs, 0.1))[:, :, None]
    idx = jnp.argmax(q_abs, axis=-1)
    quat = jnp.take_along_axis(cand, idx[:, None, None], axis=1)[:, 0]
    aw, ax, ay, az = quat[:, 0], quat[:, 1], quat[:, 2], quat[:, 3]
    bw, bx, by, bz = (rotation_base[:, 0], rotation_base[:, 1],
                      rotation_base[:, 2], rotation_base[:, 3])
    ow = aw * bw - ax * bx - ay * by - az * bz
    ox = aw * bx + ax * bw + ay * bz - az * by
    oy = aw * by - ax * bz + ay * bw + az * bx
    oz = aw * bz + ax * by - ay * bx + az * bw
    q = jnp.stack([ow, ox, oy, oz], -1)
    q = jnp.where(q[:, :1] < 0, -q, q)                                    # standardize
    rot = q / jnp.maximum(jnp.linalg.norm(q, axis=-1, keepdims=True), 1e-12)
    scaling = jnp.exp(scaling_raw)
    opacity = jax.nn.sigmoid(opacity_raw)
    r_, x_, y_, z_ = rot[:, 0], rot[:, 1], rot[:, 2], rot[:, 3]
    R = jnp.stack([
        jnp.stack([1 - 2 * (y_ * y_ + z_ * z_), 2 * (x_ * y_ - r_ * z_), 2 * (x_ * z_ + r_ * y_)], -1),
        jnp.stack([2 * (x_ * y_ + r_ * z_), 1 - 2 * (x_ * x_ + z_ * z_), 2 * (y_ * z_ - r_ * x_)], -1),
        jnp.stack([2 * (x_ * z_ - r_ * y_), 2 * (y_ * z_ + r_ * x_), 1 - 2 * (x_ * x_ + y_ * y_)], -1),
    ], axis=1)
    L = R * scaling[:, None, :]
    C = jnp.einsum('nij,nkj->nik', L, L)
    cov = jnp.stack([C[:, 0, 0], C[:, 0, 1], C[:, 0, 2],
                     C[:, 1, 1], C[:, 1, 2], C[:, 2, 2]], -1)
    return xyz, rot, scaling, opacity, cov


def _make_rigid_transforms(key, n):
    """Deterministic per-point rigid 4x4 transforms (stand-in for geo_creator LBS)."""
    k1, k2 = jax.random.split(key)
    aa = jax.random.normal(k1, (n, 3), jnp.float32) * 0.3
    theta = jnp.linalg.norm(aa, axis=-1, keepdims=True)
    axis = aa / jnp.maximum(theta, 1e-8)
    ax, ay, az = axis[:, 0], axis[:, 1], axis[:, 2]
    zero = jnp.zeros_like(ax)
    K = jnp.stack([jnp.stack([zero, -az, ay], -1),
                   jnp.stack([az, zero, -ax], -1),
                   jnp.stack([-ay, ax, zero], -1)], axis=-2)
    I = jnp.eye(3, dtype=jnp.float32)[None]
    st_ = jnp.sin(theta)[..., None]
    ct_ = jnp.cos(theta)[..., None]
    R = I + st_ * K + (1.0 - ct_) * (K @ K)
    t = jax.random.normal(k2, (n, 3), jnp.float32) * 0.1
    top = jnp.concatenate([R, t[:, :, None]], axis=-1)
    bot = jnp.tile(jnp.array([[[0.0, 0.0, 0.0, 1.0]]], jnp.float32), (n, 1, 1))
    return jnp.concatenate([top, bot], axis=-2).reshape(n, 16)


if __name__ == "__main__":
    key = jax.random.PRNGKey(0)
    k_rott, k_canon, k_scale, k_rotb = jax.random.split(key, 4)

    N = 512                                    # small synthetic point cloud
    rott_flat = _make_rigid_transforms(k_rott, N)                          # [N,16]
    canonical = jax.random.normal(k_canon, (N, 3), jnp.float32)            # [N,3]
    xyz_dis = jnp.zeros((N, 3), jnp.float32)                               # param init: zeros
    scaling_raw = jnp.log(0.02 + 0.01 * jax.random.uniform(k_scale, (N, 1), jnp.float32))
    scaling_raw = jnp.tile(scaling_raw, (1, 3))                            # [N,3]
    rotation_base = (jnp.tile(jnp.array([[1.0, 0.0, 0.0, 0.0]], jnp.float32), (N, 1))
                     + 0.05 * jax.random.normal(k_rotb, (N, 4), jnp.float32))  # [N,4]
    opacity_raw = jnp.full((N, 1), jnp.log(0.1 / 0.9), jnp.float32)        # logit(0.1)

    # Hot-path usage: pre-pack statics once, pack only rott/xyz_dis per frame,
    # consume the channel-major output slab directly.
    tile, n_pad = choose_tile(N)
    stat_slab = prepack_static(canonical, scaling_raw, rotation_base, opacity_raw, n_pad)
    dyn_slab = pack_dynamic(rott_flat, xyz_dis, n_pad)
    out_slab = jax.block_until_ready(gaussian_scene_forward_packed(dyn_slab, stat_slab, tile=tile))

    outs = unpack_outputs(out_slab, N)
    xyz, rot, scaling, opacity, cov = [jax.block_until_ready(o) for o in outs]
    refs = _reference(rott_flat, canonical, xyz_dis, scaling_raw, rotation_base, opacity_raw)

    assert xyz.shape == (N, 3) and rot.shape == (N, 4)
    assert scaling.shape == (N, 3) and opacity.shape == (N, 1) and cov.shape == (N, 6)
    assert all(bool(jnp.all(jnp.isfinite(o))) for o in (xyz, rot, scaling, opacity, cov))
    names = ["xyz", "rotation", "scaling", "opacity", "cov"]
    for name, got, ref in zip(names, (xyz, rot, scaling, opacity, cov), refs):
        assert bool(jnp.allclose(got, ref, atol=2e-4, rtol=2e-4)), name
    assert bool(jnp.all(jnp.abs(jnp.sum(rot * rot, axis=-1) - 1.0) < 1e-3))
    assert bool(jnp.all(cov[:, [0, 3, 5]] >= 0.0))
    print("KERNEL_OK")
</pallas_src>

<mosaic_0001>
module attributes {stable_mosaic.version = 11 : i64} {
  func.func @_gaussian_kernel(%arg0: i32, %arg1: memref<15x8x128xf32, #tpu.memory_space<vmem>>, %arg2: memref<11x8x128xf32, #tpu.memory_space<vmem>>, %arg3: memref<17x8x128xf32, #tpu.memory_space<vmem>>) attributes {dimension_semantics = [#tpu.dimension_semantics<parallel>], iteration_bounds = array<i64: 1>, scalar_prefetch = 0 : i64, scratch_operands = 0 : i64, tpu.core_type = #tpu.core_type<tc>, window_params = [{transform_indices = @transform_0, window_bounds = array<i64: 15, 8, 128>}, {transform_indices = @transform_1, window_bounds = array<i64: 11, 8, 128>}, {transform_indices = @transform_2, window_bounds = array<i64: 17, 8, 128>}]} {
    %c0 = arith.constant 0 : index
    %c0_0 = arith.constant 0 : index
    %c0_1 = arith.constant 0 : index
    %0 = vector.load %arg1[%c0, %c0_0, %c0_1] : memref<15x8x128xf32, #tpu.memory_space<vmem>>, vector<1x8x128xf32>
    %1 = vector.shape_cast %0 : vector<1x8x128xf32> to vector<8x128xf32>
    %c1 = arith.constant 1 : index
    %c0_2 = arith.constant 0 : index
    %c0_3 = arith.constant 0 : index
    %2 = vector.load %arg1[%c1, %c0_2, %c0_3] : memref<15x8x128xf32, #tpu.memory_space<vmem>>, vector<1x8x128xf32>
    %3 = vector.shape_cast %2 : vector<1x8x128xf32> to vector<8x128xf32>
    %c2 = arith.constant 2 : index
    %c0_4 = arith.constant 0 : index
    %c0_5 = arith.constant 0 : index
    %4 = vector.load %arg1[%c2, %c0_4, %c0_5] : memref<15x8x128xf32, #tpu.memory_space<vmem>>, vector<1x8x128xf32>
    %5 = vector.shape_cast %4 : vector<1x8x128xf32> to vector<8x128xf32>
    %c3 = arith.constant 3 : index
    %c0_6 = arith.constant 0 : index
    %c0_7 = arith.constant 0 : index
    %6 = vector.load %arg1[%c3, %c0_6, %c0_7] : memref<15x8x128xf32, #tpu.memory_space<vmem>>, vector<1x8x128xf32>
    %7 = vector.shape_cast %6 : vector<1x8x128xf32> to vector<8x128xf32>
    %c4 = arith.constant 4 : index
    %c0_8 = arith.constant 0 : index
    %c0_9 = arith.constant 0 : index
    %8 = vector.load %arg1[%c4, %c0_8, %c0_9] : memref<15x8x128xf32, #tpu.memory_space<vmem>>, vector<1x8x128xf32>
    %9 = vector.shape_cast %8 : vector<1x8x128xf32> to vector<8x128xf32>
    %c5 = arith.constant 5 : index
    %c0_10 = arith.constant 0 : index
    %c0_11 = arith.constant 0 : index
    %10 = vector.load %arg1[%c5, %c0_10, %c0_11] : memref<15x8x128xf32, #tpu.memory_space<vmem>>, vector<1x8x128xf32>
    %11 = vector.shape_cast %10 : vector<1x8x128xf32> to vector<8x128xf32>
    %c6 = arith.constant 6 : index
    %c0_12 = arith.constant 0 : index
    %c0_13 = arith.constant 0 : index
    %12 = vector.load %arg1[%c6, %c0_12, %c0_13] : memref<15x8x128xf32, #tpu.memory_space<vmem>>, vector<1x8x128xf32>
    %13 = vector.shape_cast %12 : vector<1x8x128xf32> to vector<8x128xf32>
    %c7 = arith.constant 7 : index
    %c0_14 = arith.constant 0 : index
    %c0_15 = arith.constant 0 : index
    %14 = vector.load %arg1[%c7, %c0_14, %c0_15] : memref<15x8x128xf32, #tpu.memory_space<vmem>>, vector<1x8x128xf32>
    %15 = vector.shape_cast %14 : vector<1x8x128xf32> to vector<8x128xf32>
    %c8 = arith.constant 8 : index
    %c0_16 = arith.constant 0 : index
    %c0_17 = arith.constant 0 : index
    %16 = vector.load %arg1[%c8, %c0_16, %c0_17] : memref<15x8x128xf32, #tpu.memory_space<vmem>>, vector<1x8x128xf32>
    %17 = vector.shape_cast %16 : vector<1x8x128xf32> to vector<8x128xf32>
    %c9 = arith.constant 9 : index
    %c0_18 = arith.constant 0 : index
    %c0_19 = arith.constant 0 : index
    %18 = vector.load %arg1[%c9, %c0_18, %c0_19] : memref<15x8x128xf32, #tpu.memory_space<vmem>>, vector<1x8x128xf32>
    %19 = vector.shape_cast %18 : vector<1x8x128xf32> to vector<8x128xf32>
    %c10 = arith.constant 10 : index
    %c0_20 = arith.constant 0 : index
    %c0_21 = arith.constant 0 : index
    %20 = vector.load %arg1[%c10, %c0_20, %c0_21] : memref<15x8x128xf32, #tpu.memory_space<vmem>>, vector<1x8x128xf32>
    %21 = vector.shape_cast %20 : vector<1x8x128xf32> to vector<8x128xf32>
    %c11 = arith.constant 11 : index
    %c0_22 = arith.constant 0 : index
    %c0_23 = arith.constant 0 : index
    %22 = vector.load %arg1[%c11, %c0_22, %c0_23] : memref<15x8x128xf32, #tpu.memory_space<vmem>>, vector<1x8x128xf32>
    %23 = vector.shape_cast %22 : vector<1x8x128xf32> to vector<8x128xf32>
    %c12 = arith.constant 12 : index
    %c0_24 = arith.constant 0 : index
    %c0_25 = arith.constant 0 : index
    %24 = vector.load %arg1[%c12, %c0_24, %c0_25] : memref<15x8x128xf32, #tpu.memory_space<vmem>>, vector<1x8x128xf32>
    %25 = vector.shape_cast %24 : vector<1x8x128xf32> to vector<8x128xf32>
    %c13 = arith.constant 13 : index
    %c0_26 = arith.constant 0 : index
    %c0_27 = arith.constant 0 : index
    %26 = vector.load %arg1[%c13, %c0_26, %c0_27] : memref<15x8x128xf32, #tpu.memory_space<vmem>>, vector<1x8x128xf32>
    %27 = vector.shape_cast %26 : vector<1x8x128xf32> to vector<8x128xf32>
    %c14 = arith.constant 14 : index
    %c0_28 = arith.constant 0 : index
    %c0_29 = arith.constant 0 : index
    %28 = vector.load %arg1[%c14, %c0_28, %c0_29] : memref<15x8x128xf32, #tpu.memory_space<vmem>>, vector<1x8x128xf32>
    %29 = vector.shape_cast %28 : vector<1x8x128xf32> to vector<8x128xf32>
    %c0_30 = arith.constant 0 : index
    %c0_31 = arith.constant 0 : index
    %c0_32 = arith.constant 0 : index
    %30 = vector.load %arg2[%c0_30, %c0_31, %c0_32] : memref<11x8x128xf32, #tpu.memory_space<vmem>>, vector<1x8x128xf32>
    %31 = vector.shape_cast %30 : vector<1x8x128xf32> to vector<8x128xf32>
    %c1_33 = arith.constant 1 : index
    %c0_34 = arith.constant 0 : index
    %c0_35 = arith.constant 0 : index
    %32 = vector.load %arg2[%c1_33, %c0_34, %c0_35] : memref<11x8x128xf32, #tpu.memory_space<vmem>>, vector<1x8x128xf32>
    %33 = vector.shape_cast %32 : vector<1x8x128xf32> to vector<8x128xf32>
    %c2_36 = arith.constant 2 : index
    %c0_37 = arith.constant 0 : index
    %c0_38 = arith.constant 0 : index
    %34 = vector.load %arg2[%c2_36, %c0_37, %c0_38] : memref<11x8x128xf32, #tpu.memory_space<vmem>>, vector<1x8x128xf32>
    %35 = vector.shape_cast %34 : vector<1x8x128xf32> to vector<8x128xf32>
    %c3_39 = arith.constant 3 : index
    %c0_40 = arith.constant 0 : index
    %c0_41 = arith.constant 0 : index
    %36 = vector.load %arg2[%c3_39, %c0_40, %c0_41] : memref<11x8x128xf32, #tpu.memory_space<vmem>>, vector<1x8x128xf32>
    %37 = vector.shape_cast %36 : vector<1x8x128xf32> to vector<8x128xf32>
    %c4_42 = arith.constant 4 : index
    %c0_43 = arith.constant 0 : index
    %c0_44 = arith.constant 0 : index
    %38 = vector.load %arg2[%c4_42, %c0_43, %c0_44] : memref<11x8x128xf32, #tpu.memory_space<vmem>>, vector<1x8x128xf32>
    %39 = vector.shape_cast %38 : vector<1x8x128xf32> to vector<8x128xf32>
    %c5_45 = arith.constant 5 : index
    %c0_46 = arith.constant 0 : index
    %c0_47 = arith.constant 0 : index
    %40 = vector.load %arg2[%c5_45, %c0_46, %c0_47] : memref<11x8x128xf32, #tpu.memory_space<vmem>>, vector<1x8x128xf32>
    %41 = vector.shape_cast %40 : vector<1x8x128xf32> to vector<8x128xf32>
    %c6_48 = arith.constant 6 : index
    %c0_49 = arith.constant 0 : index
    %c0_50 = arith.constant 0 : index
    %42 = vector.load %arg2[%c6_48, %c0_49, %c0_50] : memref<11x8x128xf32, #tpu.memory_space<vmem>>, vector<1x8x128xf32>
    %43 = vector.shape_cast %42 : vector<1x8x128xf32> to vector<8x128xf32>
    %c7_51 = arith.constant 7 : index
    %c0_52 = arith.constant 0 : index
    %c0_53 = arith.constant 0 : index
    %44 = vector.load %arg2[%c7_51, %c0_52, %c0_53] : memref<11x8x128xf32, #tpu.memory_space<vmem>>, vector<1x8x128xf32>
    %45 = vector.shape_cast %44 : vector<1x8x128xf32> to vector<8x128xf32>
    %c8_54 = arith.constant 8 : index
    %c0_55 = arith.constant 0 : index
    %c0_56 = arith.constant 0 : index
    %46 = vector.load %arg2[%c8_54, %c0_55, %c0_56] : memref<11x8x128xf32, #tpu.memory_space<vmem>>, vector<1x8x128xf32>
    %47 = vector.shape_cast %46 : vector<1x8x128xf32> to vector<8x128xf32>
    %c9_57 = arith.constant 9 : index
    %c0_58 = arith.constant 0 : index
    %c0_59 = arith.constant 0 : index
    %48 = vector.load %arg2[%c9_57, %c0_58, %c0_59] : memref<11x8x128xf32, #tpu.memory_space<vmem>>, vector<1x8x128xf32>
    %49 = vector.shape_cast %48 : vector<1x8x128xf32> to vector<8x128xf32>
    %c10_60 = arith.constant 10 : index
    %c0_61 = arith.constant 0 : index
    %c0_62 = arith.constant 0 : index
    %50 = vector.load %arg2[%c10_60, %c0_61, %c0_62] : memref<11x8x128xf32, #tpu.memory_space<vmem>>, vector<1x8x128xf32>
    %51 = vector.shape_cast %50 : vector<1x8x128xf32> to vector<8x128xf32>
    %52 = arith.addf %31, %25 : vector<8x128xf32>
    %53 = arith.addf %33, %27 : vector<8x128xf32>
    %54 = arith.addf %35, %29 : vector<8x128xf32>
    %55 = arith.mulf %1, %52 : vector<8x128xf32>
    %56 = arith.mulf %3, %53 : vector<8x128xf32>
    %57 = arith.addf %55, %56 : vector<8x128xf32>
    %58 = arith.mulf %5, %54 : vector<8x128xf32>
    %59 = arith.addf %57, %58 : vector<8x128xf32>
    %60 = arith.addf %59, %7 : vector<8x128xf32>
    %c0_63 = arith.constant 0 : index
    %c0_64 = arith.constant 0 : index
    %c0_65 = arith.constant 0 : index
    %61 = vector.load %arg3[%c0_63, %c0_64, %c0_65] : memref<17x8x128xf32, #tpu.memory_space<vmem>>, vector<1x8x128xf32>
    %62 = vector.shape_cast %61 : vector<1x8x128xf32> to vector<8x128xf32>
    %63 = vector.shape_cast %60 : vector<8x128xf32> to vector<1x8x128xf32>
    tpu.vector_store %arg3[%c0_63, %c0_64, %c0_65], %63 {strides = array<i32>} : memref<17x8x128xf32, #tpu.memory_space<vmem>>, vector<1x8x128xf32>,
    %64 = arith.mulf %9, %52 : vector<8x128xf32>
    %65 = arith.mulf %11, %53 : vector<8x128xf32>
    %66 = arith.addf %64, %65 : vector<8x128xf32>
    %67 = arith.mulf %13, %54 : vector<8x128xf32>
    %68 = arith.addf %66, %67 : vector<8x128xf32>
    %69 = arith.addf %68, %15 : vector<8x128xf32>
    %c1_66 = arith.constant 1 : index
    %c0_67 = arith.constant 0 : index
    %c0_68 = arith.constant 0 : index
    %70 = vector.load %arg3[%c1_66, %c0_67, %c0_68] : memref<17x8x128xf32, #tpu.memory_space<vmem>>, vector<1x8x128xf32>
    %71 = vector.shape_cast %70 : vector<1x8x128xf32> to vector<8x128xf32>
    %72 = vector.shape_cast %69 : vector<8x128xf32> to vector<1x8x128xf32>
    tpu.vector_store %arg3[%c1_66, %c0_67, %c0_68], %72 {strides = array<i32>} : memref<17x8x128xf32, #tpu.memory_space<vmem>>, vector<1x8x128xf32>,
    %73 = arith.mulf %17, %52 : vector<8x128xf32>
    %74 = arith.mulf %19, %53 : vector<8x128xf32>
    %75 = arith.addf %73, %74 : vector<8x128xf32>
    %76 = arith.mulf %21, %54 : vector<8x128xf32>
    %77 = arith.addf %75, %76 : vector<8x128xf32>
    %78 = arith.addf %77, %23 : vector<8x128xf32>
    %c2_69 = arith.constant 2 : index
    %c0_70 = arith.constant 0 : index
    %c0_71 = arith.constant 0 : index
    %79 = vector.load %arg3[%c2_69, %c0_70, %c0_71] : memref<17x8x128xf32, #tpu.memory_space<vmem>>, vector<1x8x128xf32>
    %80 = vector.shape_cast %79 : vector<1x8x128xf32> to vector<8x128xf32>
    %81 = vector.shape_cast %78 : vector<8x128xf32> to vector<1x8x128xf32>
    tpu.vector_store %arg3[%c2_69, %c0_70, %c0_71], %81 {strides = array<i32>} : memref<17x8x128xf32, #tpu.memory_space<vmem>>, vector<1x8x128xf32>,
    %cst = arith.constant 1.000000e+00 : f32
    %82 = vector.broadcast %cst : f32 to vector<8x128xf32>
    %83 = arith.addf %82, %1 : vector<8x128xf32>
    %84 = arith.addf %83, %11 : vector<8x128xf32>
    %85 = arith.addf %84, %21 : vector<8x128xf32>
    %cst_72 = arith.constant 0.000000e+00 : f32
    %86 = vector.broadcast %cst_72 : f32 to vector<8x128xf32>
    %87 = arith.maximumf %85, %86 : vector<8x128xf32>
    %cst_73 = arith.constant 1.000000e+00 : f32
    %88 = vector.broadcast %cst_73 : f32 to vector<8x128xf32>
    %89 = arith.addf %88, %1 : vector<8x128xf32>
    %90 = arith.subf %89, %11 : vector<8x128xf32>
    %91 = arith.subf %90, %21 : vector<8x128xf32>
    %cst_74 = arith.constant 0.000000e+00 : f32
    %92 = vector.broadcast %cst_74 : f32 to vector<8x128xf32>
    %93 = arith.maximumf %91, %92 : vector<8x128xf32>
    %cst_75 = arith.constant 1.000000e+00 : f32
    %94 = vector.broadcast %cst_75 : f32 to vector<8x128xf32>
    %95 = arith.subf %94, %1 : vector<8x128xf32>
    %96 = arith.addf %95, %11 : vector<8x128xf32>
    %97 = arith.subf %96, %21 : vector<8x128xf32>
    %cst_76 = arith.constant 0.000000e+00 : f32
    %98 = vector.broadcast %cst_76 : f32 to vector<8x128xf32>
    %99 = arith.maximumf %97, %98 : vector<8x128xf32>
    %cst_77 = arith.constant 1.000000e+00 : f32
    %100 = vector.broadcast %cst_77 : f32 to vector<8x128xf32>
    %101 = arith.subf %100, %1 : vector<8x128xf32>
    %102 = arith.subf %101, %11 : vector<8x128xf32>
    %103 = arith.addf %102, %21 : vector<8x128xf32>
    %cst_78 = arith.constant 0.000000e+00 : f32
    %104 = vector.broadcast %cst_78 : f32 to vector<8x128xf32>
    %105 = arith.maximumf %103, %104 : vector<8x128xf32>
    %106 = arith.maximumf %87, %93 : vector<8x128xf32>
    %107 = arith.maximumf %99, %105 : vector<8x128xf32>
    %108 = arith.maximumf %106, %107 : vector<8x128xf32>
    %109 = arith.cmpf oge, %87, %108 : vector<8x128xf32>
    %110 = arith.cmpf oge, %93, %108 : vector<8x128xf32>
    %111 = arith.cmpf oge, %99, %108 : vector<8x128xf32>
    %112 = arith.subf %19, %13 : vector<8x128xf32>
    %113 = arith.subf %5, %17 : vector<8x128xf32>
    %114 = arith.subf %9, %3 : vector<8x128xf32>
    %115 = arith.select %111, %113, %114 : vector<8x128xi1>, vector<8x128xf32>
    %116 = arith.select %110, %112, %115 : vector<8x128xi1>, vector<8x128xf32>
    %117 = arith.select %109, %87, %116 : vector<8x128xi1>, vector<8x128xf32>
    %118 = arith.subf %19, %13 : vector<8x128xf32>
    %119 = arith.addf %9, %3 : vector<8x128xf32>
    %120 = arith.addf %5, %17 : vector<8x128xf32>
    %121 = arith.select %111, %119, %120 : vector<8x128xi1>, vector<8x128xf32>
    %122 = arith.select %110, %93, %121 : vector<8x128xi1>, vector<8x128xf32>
    %123 = arith.select %109, %118, %122 : vector<8x128xi1>, vector<8x128xf32>
    %124 = arith.subf %5, %17 : vector<8x128xf32>
    %125 = arith.addf %9, %3 : vector<8x128xf32>
    %126 = arith.addf %13, %19 : vector<8x128xf32>
    %127 = arith.select %111, %99, %126 : vector<8x128xi1>, vector<8x128xf32>
    %128 = arith.select %110, %125, %127 : vector<8x128xi1>, vector<8x128xf32>
    %129 = arith.select %109, %124, %128 : vector<8x128xi1>, vector<8x128xf32>
    %130 = arith.subf %9, %3 : vector<8x128xf32>
    %131 = arith.addf %5, %17 : vector<8x128xf32>
    %132 = arith.addf %13, %19 : vector<8x128xf32>
    %133 = arith.select %111, %132, %105 : vector<8x128xi1>, vector<8x128xf32>
    %134 = arith.select %110, %131, %133 : vector<8x128xi1>, vector<8x128xf32>
    %135 = arith.select %109, %130, %134 : vector<8x128xi1>, vector<8x128xf32>
    %136 = arith.mulf %117, %43 : vector<8x128xf32>
    %137 = arith.mulf %123, %45 : vector<8x128xf32>
    %138 = arith.subf %136, %137 : vector<8x128xf32>
    %139 = arith.mulf %129, %47 : vector<8x128xf32>
    %140 = arith.subf %138, %139 : vector<8x128xf32>
    %141 = arith.mulf %135, %49 : vector<8x128xf32>
    %142 = arith.subf %140, %141 : vector<8x128xf32>
    %143 = arith.mulf %117, %45 : vector<8x128xf32>
    %144 = arith.mulf %123, %43 : vector<8x128xf32>
    %145 = arith.addf %143, %144 : vector<8x128xf32>
    %146 = arith.mulf %129, %49 : vector<8x128xf32>
    %147 = arith.addf %145, %146 : vector<8x128xf32>
    %148 = arith.mulf %135, %47 : vector<8x128xf32>
    %149 = arith.subf %147, %148 : vector<8x128xf32>
    %150 = arith.mulf %117, %47 : vector<8x128xf32>
    %151 = arith.mulf %123, %49 : vector<8x128xf32>
    %152 = arith.subf %150, %151 : vector<8x128xf32>
    %153 = arith.mulf %129, %43 : vector<8x128xf32>
    %154 = arith.addf %152, %153 : vector<8x128xf32>
    %155 = arith.mulf %135, %45 : vector<8x128xf32>
    %156 = arith.addf %154, %155 : vector<8x128xf32>
    %157 = arith.mulf %117, %49 : vector<8x128xf32>
    %158 = arith.mulf %123, %47 : vector<8x128xf32>
    %159 = arith.addf %157, %158 : vector<8x128xf32>
    %160 = arith.mulf %129, %45 : vector<8x128xf32>
    %161 = arith.subf %159, %160 : vector<8x128xf32>
    %162 = arith.mulf %135, %43 : vector<8x128xf32>
    %163 = arith.addf %161, %162 : vector<8x128xf32>
    %cst_79 = arith.constant 0.000000e+00 : f32
    %164 = vector.broadcast %cst_79 : f32 to vector<8x128xf32>
    %165 = arith.cmpf olt, %142, %164 : vector<8x128xf32>
    %cst_80 = arith.constant 0.000000e+00 : f32
    %166 = vector.broadcast %cst_80 : f32 to vector<8x128xf32>
    %167 = arith.subf %166, %142 : vector<8x128xf32>
    %168 = arith.select %165, %167, %142 : vector<8x128xi1>, vector<8x128xf32>
    %cst_81 = arith.constant 0.000000e+00 : f32
    %169 = vector.broadcast %cst_81 : f32 to vector<8x128xf32>
    %170 = arith.subf %169, %149 : vector<8x128xf32>
    %171 = arith.select %165, %170, %149 : vector<8x128xi1>, vector<8x128xf32>
    %cst_82 = arith.constant 0.000000e+00 : f32
    %172 = vector.broadcast %cst_82 : f32 to vector<8x128xf32>
    %173 = arith.subf %172, %156 : vector<8x128xf32>
    %174 = arith.select %165, %173, %156 : vector<8x128xi1>, vector<8x128xf32>
    %cst_83 = arith.constant 0.000000e+00 : f32
    %175 = vector.broadcast %cst_83 : f32 to vector<8x128xf32>
    %176 = arith.subf %175, %163 : vector<8x128xf32>
    %177 = arith.select %165, %176, %163 : vector<8x128xi1>, vector<8x128xf32>
    %178 = arith.mulf %168, %168 : vector<8x128xf32>
    %179 = arith.mulf %171, %171 : vector<8x128xf32>
    %180 = arith.addf %178, %179 : vector<8x128xf32>
    %181 = arith.mulf %174, %174 : vector<8x128xf32>
    %182 = arith.addf %180, %181 : vector<8x128xf32>
    %183 = arith.mulf %177, %177 : vector<8x128xf32>
    %184 = arith.addf %182, %183 : vector<8x128xf32>
    %cst_84 = arith.constant 1.000000e-24 : f32
    %185 = vector.broadcast %cst_84 : f32 to vector<8x128xf32>
    %186 = arith.maximumf %184, %185 : vector<8x128xf32>
    %187 = math.rsqrt %186 : vector<8x128xf32>
    %188 = arith.mulf %168, %187 : vector<8x128xf32>
    %189 = arith.mulf %171, %187 : vector<8x128xf32>
    %190 = arith.mulf %174, %187 : vector<8x128xf32>
    %191 = arith.mulf %177, %187 : vector<8x128xf32>
    %c3_85 = arith.constant 3 : index
    %c0_86 = arith.constant 0 : index
    %c0_87 = arith.constant 0 : index
    %192 = vector.load %arg3[%c3_85, %c0_86, %c0_87] : memref<17x8x128xf32, #tpu.memory_space<vmem>>, vector<1x8x128xf32>
    %193 = vector.shape_cast %192 : vector<1x8x128xf32> to vector<8x128xf32>
    %194 = vector.shape_cast %188 : vector<8x128xf32> to vector<1x8x128xf32>
    tpu.vector_store %arg3[%c3_85, %c0_86, %c0_87], %194 {strides = array<i32>} : memref<17x8x128xf32, #tpu.memory_space<vmem>>, vector<1x8x128xf32>,
    %c4_88 = arith.constant 4 : index
    %c0_89 = arith.constant 0 : index
    %c0_90 = arith.constant 0 : index
    %195 = vector.load %arg3[%c4_88, %c0_89, %c0_90] : memref<17x8x128xf32, #tpu.memory_space<vmem>>, vector<1x8x128xf32>
    %196 = vector.shape_cast %195 : vector<1x8x128xf32> to vector<8x128xf32>
    %197 = vector.shape_cast %189 : vector<8x128xf32> to vector<1x8x128xf32>
    tpu.vector_store %arg3[%c4_88, %c0_89, %c0_90], %197 {strides = array<i32>} : memref<17x8x128xf32, #tpu.memory_space<vmem>>, vector<1x8x128xf32>,
    %c5_91 = arith.constant 5 : index
    %c0_92 = arith.constant 0 : index
    %c0_93 = arith.constant 0 : index
    %198 = vector.load %arg3[%c5_91, %c0_92, %c0_93] : memref<17x8x128xf32, #tpu.memory_space<vmem>>, vector<1x8x128xf32>
    %199 = vector.shape_cast %198 : vector<1x8x128xf32> to vector<8x128xf32>
    %200 = vector.shape_cast %190 : vector<8x128xf32> to vector<1x8x128xf32>
    tpu.vector_store %arg3[%c5_91, %c0_92, %c0_93], %200 {strides = array<i32>} : memref<17x8x128xf32, #tpu.memory_space<vmem>>, vector<1x8x128xf32>,
    %c6_94 = arith.constant 6 : index
    %c0_95 = arith.constant 0 : index
    %c0_96 = arith.constant 0 : index
    %201 = vector.load %arg3[%c6_94, %c0_95, %c0_96] : memref<17x8x128xf32, #tpu.memory_space<vmem>>, vector<1x8x128xf32>
    %202 = vector.shape_cast %201 : vector<1x8x128xf32> to vector<8x128xf32>
    %203 = vector.shape_cast %191 : vector<8x128xf32> to vector<1x8x128xf32>
    tpu.vector_store %arg3[%c6_94, %c0_95, %c0_96], %203 {strides = array<i32>} : memref<17x8x128xf32, #tpu.memory_space<vmem>>, vector<1x8x128xf32>,
    %204 = math.exp %37 : vector<8x128xf32>
    %205 = math.exp %39 : vector<8x128xf32>
    %206 = math.exp %41 : vector<8x128xf32>
    %c7_97 = arith.constant 7 : index
    %c0_98 = arith.constant 0 : index
    %c0_99 = arith.constant 0 : index
    %207 = vector.load %arg3[%c7_97, %c0_98, %c0_99] : memref<17x8x128xf32, #tpu.memory_space<vmem>>, vector<1x8x128xf32>
    %208 = vector.shape_cast %207 : vector<1x8x128xf32> to vector<8x128xf32>
    %209 = vector.shape_cast %204 : vector<8x128xf32> to vector<1x8x128xf32>
    tpu.vector_store %arg3[%c7_97, %c0_98, %c0_99], %209 {strides = array<i32>} : memref<17x8x128xf32, #tpu.memory_space<vmem>>, vector<1x8x128xf32>,
    %c8_100 = arith.constant 8 : index
    %c0_101 = arith.constant 0 : index
    %c0_102 = arith.constant 0 : index
    %210 = vector.load %arg3[%c8_100, %c0_101, %c0_102] : memref<17x8x128xf32, #tpu.memory_space<vmem>>, vector<1x8x128xf32>
    %211 = vector.shape_cast %210 : vector<1x8x128xf32> to vector<8x128xf32>
    %212 = vector.shape_cast %205 : vector<8x128xf32> to vector<1x8x128xf32>
    tpu.vector_store %arg3[%c8_100, %c0_101, %c0_102], %212 {strides = array<i32>} : memref<17x8x128xf32, #tpu.memory_space<vmem>>, vector<1x8x128xf32>,
    %c9_103 = arith.constant 9 : index
    %c0_104 = arith.constant 0 : index
    %c0_105 = arith.constant 0 : index
    %213 = vector.load %arg3[%c9_103, %c0_104, %c0_105] : memref<17x8x128xf32, #tpu.memory_space<vmem>>, vector<1x8x128xf32>
    %214 = vector.shape_cast %213 : vector<1x8x128xf32> to vector<8x128xf32>
    %215 = vector.shape_cast %206 : vector<8x128xf32> to vector<1x8x128xf32>
    tpu.vector_store %arg3[%c9_103, %c0_104, %c0_105], %215 {strides = array<i32>} : memref<17x8x128xf32, #tpu.memory_space<vmem>>, vector<1x8x128xf32>,
    %cst_106 = arith.constant 5.000000e-01 : f32
    %216 = vector.broadcast %cst_106 : f32 to vector<8x128xf32>
    %217 = arith.mulf %216, %51 : vector<8x128xf32>
    %218 = math.tanh %217 : vector<8x128xf32>
    %cst_107 = arith.constant 1.000000e+00 : f32
    %219 = vector.broadcast %cst_107 : f32 to vector<8x128xf32>
    %220 = arith.addf %218, %219 : vector<8x128xf32>
    %cst_108 = arith.constant 5.000000e-01 : f32
    %221 = vector.broadcast %cst_108 : f32 to vector<8x128xf32>
    %222 = arith.mulf %221, %220 : vector<8x128xf32>
    %c10_109 = arith.constant 10 : index
    %c0_110 = arith.constant 0 : index
    %c0_111 = arith.constant 0 : index
    %223 = vector.load %arg3[%c10_109, %c0_110, %c0_111] : memref<17x8x128xf32, #tpu.memory_space<vmem>>, vector<1x8x128xf32>
    %224 = vector.shape_cast %223 : vector<1x8x128xf32> to vector<8x128xf32>
    %225 = vector.shape_cast %222 : vector<8x128xf32> to vector<1x8x128xf32>
    tpu.vector_store %arg3[%c10_109, %c0_110, %c0_111], %225 {strides = array<i32>} : memref<17x8x128xf32, #tpu.memory_space<vmem>>, vector<1x8x128xf32>,
    %226 = arith.mulf %190, %190 : vector<8x128xf32>
    %227 = arith.mulf %191, %191 : vector<8x128xf32>
    %228 = arith.addf %226, %227 : vector<8x128xf32>
    %cst_112 = arith.constant 2.000000e+00 : f32
    %229 = vector.broadcast %cst_112 : f32 to vector<8x128xf32>
    %230 = arith.mulf %229, %228 : vector<8x128xf32>
    %cst_113 = arith.constant 1.000000e+00 : f32
    %231 = vector.broadcast %cst_113 : f32 to vector<8x128xf32>
    %232 = arith.subf %231, %230 : vector<8x128xf32>
    %233 = arith.mulf %189, %190 : vector<8x128xf32>
    %234 = arith.mulf %188, %191 : vector<8x128xf32>
    %235 = arith.subf %233, %234 : vector<8x128xf32>
    %cst_114 = arith.constant 2.000000e+00 : f32
    %236 = vector.broadcast %cst_114 : f32 to vector<8x128xf32>
    %237 = arith.mulf %236, %235 : vector<8x128xf32>
    %238 = arith.mulf %189, %191 : vector<8x128xf32>
    %239 = arith.mulf %188, %190 : vector<8x128xf32>
    %240 = arith.addf %238, %239 : vector<8x128xf32>
    %cst_115 = arith.constant 2.000000e+00 : f32
    %241 = vector.broadcast %cst_115 : f32 to vector<8x128xf32>
    %242 = arith.mulf %241, %240 : vector<8x128xf32>
    %243 = arith.mulf %189, %190 : vector<8x128xf32>
    %244 = arith.mulf %188, %191 : vector<8x128xf32>
    %245 = arith.addf %243, %244 : vector<8x128xf32>
    %cst_116 = arith.constant 2.000000e+00 : f32
    %246 = vector.broadcast %cst_116 : f32 to vector<8x128xf32>
    %247 = arith.mulf %246, %245 : vector<8x128xf32>
    %248 = arith.mulf %189, %189 : vector<8x128xf32>
    %249 = arith.mulf %191, %191 : vector<8x128xf32>
    %250 = arith.addf %248, %249 : vector<8x128xf32>
    %cst_117 = arith.constant 2.000000e+00 : f32
    %251 = vector.broadcast %cst_117 : f32 to vector<8x128xf32>
    %252 = arith.mulf %251, %250 : vector<8x128xf32>
    %cst_118 = arith.constant 1.000000e+00 : f32
    %253 = vector.broadcast %cst_118 : f32 to vector<8x128xf32>
    %254 = arith.subf %253, %252 : vector<8x128xf32>
    %255 = arith.mulf %190, %191 : vector<8x128xf32>
    %256 = arith.mulf %188, %189 : vector<8x128xf32>
    %257 = arith.subf %255, %256 : vector<8x128xf32>
    %cst_119 = arith.constant 2.000000e+00 : f32
    %258 = vector.broadcast %cst_119 : f32 to vector<8x128xf32>
    %259 = arith.mulf %258, %257 : vector<8x128xf32>
    %260 = arith.mulf %189, %191 : vector<8x128xf32>
    %261 = arith.mulf %188, %190 : vector<8x128xf32>
    %262 = arith.subf %260, %261 : vector<8x128xf32>
    %cst_120 = arith.constant 2.000000e+00 : f32
    %263 = vector.broadcast %cst_120 : f32 to vector<8x128xf32>
    %264 = arith.mulf %263, %262 : vector<8x128xf32>
    %265 = arith.mulf %190, %191 : vector<8x128xf32>
    %266 = arith.mulf %188, %189 : vector<8x128xf32>
    %267 = arith.addf %265, %266 : vector<8x128xf32>
    %cst_121 = arith.constant 2.000000e+00 : f32
    %268 = vector.broadcast %cst_121 : f32 to vector<8x128xf32>
    %269 = arith.mulf %268, %267 : vector<8x128xf32>
    %270 = arith.mulf %189, %189 : vector<8x128xf32>
    %271 = arith.mulf %190, %190 : vector<8x128xf32>
    %272 = arith.addf %270, %271 : vector<8x128xf32>
    %cst_122 = arith.constant 2.000000e+00 : f32
    %273 = vector.broadcast %cst_122 : f32 to vector<8x128xf32>
    %274 = arith.mulf %273, %272 : vector<8x128xf32>
    %cst_123 = arith.constant 1.000000e+00 : f32
    %275 = vector.broadcast %cst_123 : f32 to vector<8x128xf32>
    %276 = arith.subf %275, %274 : vector<8x128xf32>
    %277 = arith.mulf %232, %204 : vector<8x128xf32>
    %278 = arith.mulf %237, %205 : vector<8x128xf32>
    %279 = arith.mulf %242, %206 : vector<8x128xf32>
    %280 = arith.mulf %247, %204 : vector<8x128xf32>
    %281 = arith.mulf %254, %205 : vector<8x128xf32>
    %282 = arith.mulf %259, %206 : vector<8x128xf32>
    %283 = arith.mulf %264, %204 : vector<8x128xf32>
    %284 = arith.mulf %269, %205 : vector<8x128xf32>
    %285 = arith.mulf %276, %206 : vector<8x128xf32>
    %286 = arith.mulf %277, %277 : vector<8x128xf32>
    %287 = arith.mulf %278, %278 : vector<8x128xf32>
    %288 = arith.addf %286, %287 : vector<8x128xf32>
    %289 = arith.mulf %279, %279 : vector<8x128xf32>
    %290 = arith.addf %288, %289 : vector<8x128xf32>
    %c11_124 = arith.constant 11 : index
    %c0_125 = arith.constant 0 : index
    %c0_126 = arith.constant 0 : index
    %291 = vector.load %arg3[%c11_124, %c0_125, %c0_126] : memref<17x8x128xf32, #tpu.memory_space<vmem>>, vector<1x8x128xf32>
    %292 = vector.shape_cast %291 : vector<1x8x128xf32> to vector<8x128xf32>
    %293 = vector.shape_cast %290 : vector<8x128xf32> to vector<1x8x128xf32>
    tpu.vector_store %arg3[%c11_124, %c0_125, %c0_126], %293 {strides = array<i32>} : memref<17x8x128xf32, #tpu.memory_space<vmem>>, vector<1x8x128xf32>,
    %294 = arith.mulf %277, %280 : vector<8x128xf32>
    %295 = arith.mulf %278, %281 : vector<8x128xf32>
    %296 = arith.addf %294, %295 : vector<8x128xf32>
    %297 = arith.mulf %279, %282 : vector<8x128xf32>
    %298 = arith.addf %296, %297 : vector<8x128xf32>
    %c12_127 = arith.constant 12 : index
    %c0_128 = arith.constant 0 : index
    %c0_129 = arith.constant 0 : index
    %299 = vector.load %arg3[%c12_127, %c0_128, %c0_129] : memref<17x8x128xf32, #tpu.memory_space<vmem>>, vector<1x8x128xf32>
    %300 = vector.shape_cast %299 : vector<1x8x128xf32> to vector<8x128xf32>
    %301 = vector.shape_cast %298 : vector<8x128xf32> to vector<1x8x128xf32>
    tpu.vector_store %arg3[%c12_127, %c0_128, %c0_129], %301 {strides = array<i32>} : memref<17x8x128xf32, #tpu.memory_space<vmem>>, vector<1x8x128xf32>,
    %302 = arith.mulf %277, %283 : vector<8x128xf32>
    %303 = arith.mulf %278, %284 : vector<8x128xf32>
    %304 = arith.addf %302, %303 : vector<8x128xf32>
    %305 = arith.mulf %279, %285 : vector<8x128xf32>
    %306 = arith.addf %304, %305 : vector<8x128xf32>
    %c13_130 = arith.constant 13 : index
    %c0_131 = arith.constant 0 : index
    %c0_132 = arith.constant 0 : index
    %307 = vector.load %arg3[%c13_130, %c0_131, %c0_132] : memref<17x8x128xf32, #tpu.memory_space<vmem>>, vector<1x8x128xf32>
    %308 = vector.shape_cast %307 : vector<1x8x128xf32> to vector<8x128xf32>
    %309 = vector.shape_cast %306 : vector<8x128xf32> to vector<1x8x128xf32>
    tpu.vector_store %arg3[%c13_130, %c0_131, %c0_132], %309 {strides = array<i32>} : memref<17x8x128xf32, #tpu.memory_space<vmem>>, vector<1x8x128xf32>,
    %310 = arith.mulf %280, %280 : vector<8x128xf32>
    %311 = arith.mulf %281, %281 : vector<8x128xf32>
    %312 = arith.addf %310, %311 : vector<8x128xf32>
    %313 = arith.mulf %282, %282 : vector<8x128xf32>
    %314 = arith.addf %312, %313 : vector<8x128xf32>
    %c14_133 = arith.constant 14 : index
    %c0_134 = arith.constant 0 : index
    %c0_135 = arith.constant 0 : index
    %315 = vector.load %arg3[%c14_133, %c0_134, %c0_135] : memref<17x8x128xf32, #tpu.memory_space<vmem>>, vector<1x8x128xf32>
    %316 = vector.shape_cast %315 : vector<1x8x128xf32> to vector<8x128xf32>
    %317 = vector.shape_cast %314 : vector<8x128xf32> to vector<1x8x128xf32>
    tpu.vector_store %arg3[%c14_133, %c0_134, %c0_135], %317 {strides = array<i32>} : memref<17x8x128xf32, #tpu.memory_space<vmem>>, vector<1x8x128xf32>,
    %318 = arith.mulf %280, %283 : vector<8x128xf32>
    %319 = arith.mulf %281, %284 : vector<8x128xf32>
    %320 = arith.addf %318, %319 : vector<8x128xf32>
    %321 = arith.mulf %282, %285 : vector<8x128xf32>
    %322 = arith.addf %320, %321 : vector<8x128xf32>
    %c15 = arith.constant 15 : index
    %c0_136 = arith.constant 0 : index
    %c0_137 = arith.constant 0 : index
    %323 = vector.load %arg3[%c15, %c0_136, %c0_137] : memref<17x8x128xf32, #tpu.memory_space<vmem>>, vector<1x8x128xf32>
    %324 = vector.shape_cast %323 : vector<1x8x128xf32> to vector<8x128xf32>
    %325 = vector.shape_cast %322 : vector<8x128xf32> to vector<1x8x128xf32>
    tpu.vector_store %arg3[%c15, %c0_136, %c0_137], %325 {strides = array<i32>} : memref<17x8x128xf32, #tpu.memory_space<vmem>>, vector<1x8x128xf32>,
    %326 = arith.mulf %283, %283 : vector<8x128xf32>
    %327 = arith.mulf %284, %284 : vector<8x128xf32>
    %328 = arith.addf %326, %327 : vector<8x128xf32>
    %329 = arith.mulf %285, %285 : vector<8x128xf32>
    %330 = arith.addf %328, %329 : vector<8x128xf32>
    %c16 = arith.constant 16 : index
    %c0_138 = arith.constant 0 : index
    %c0_139 = arith.constant 0 : index
    %331 = vector.load %arg3[%c16, %c0_138, %c0_139] : memref<17x8x128xf32, #tpu.memory_space<vmem>>, vector<1x8x128xf32>
    %332 = vector.shape_cast %331 : vector<1x8x128xf32> to vector<8x128xf32>
    %333 = vector.shape_cast %330 : vector<8x128xf32> to vector<1x8x128xf32>
    tpu.vector_store %arg3[%c16, %c0_138, %c0_139], %333 {strides = array<i32>} : memref<17x8x128xf32, #tpu.memory_space<vmem>>, vector<1x8x128xf32>,
    return
  }
  func.func @transform_0(%arg0: i32) -> (i32, i32, i32) {
    %c0_i32 = arith.constant 0 : i32
    %c0_i32_0 = arith.constant 0 : i32
    %c0_i32_1 = arith.constant 0 : i32
    return %c0_i32, %arg0, %c0_i32_0 : i32, i32, i32
  }
  func.func @transform_1(%arg0: i32) -> (i32, i32, i32) {
    %c0_i32 = arith.constant 0 : i32
    %c0_i32_0 = arith.constant 0 : i32
    %c0_i32_1 = arith.constant 0 : i32
    return %c0_i32, %arg0, %c0_i32_0 : i32, i32, i32
  }
  func.func @transform_2(%arg0: i32) -> (i32, i32, i32) {
    %c0_i32 = arith.constant 0 : i32
    %c0_i32_0 = arith.constant 0 : i32
    %c0_i32_1 = arith.constant 0 : i32
    return %c0_i32, %arg0, %c0_i32_0 : i32, i32, i32
  }
}

</mosaic_0001>

<bundles_post_ra>
// kernel: tpu_custom_call.1
= control target key start
LH: loop header
LB: loop body
LE: loop exit
PB: predicated region body
PF: predicated region fallthrough
CT: control target
= control target key end

     0   :  { %7 = vsyncpa [#allocation3], 0  ;;  %s503_s0 = inlined_call_operand.hbm [shape: f32[15,8,128], index: 0, kind: input, shape index: {}]   ;;  %s504_s1 = inlined_call_operand.hbm [shape: f32[11,8,128], index: 1, kind: input, shape index: {}]   ;;  %s505_s2 = inlined_call_operand.hbm [shape: f32[17,8,128], index: 2, kind: output, shape index: {}]  }
   0x1   :  { %8 = vsyncpa [#allocation6], 0 }
   0x2   :  { %9 = vsyncpa [#allocation4], 0  ;;  %s416_s9 = smov [#allocation2]   ;;  %s344_s13 = scalar_lea.hbm %s503_s0, 1920 }
   0x3   :  { %s15_s10 = sshll.u32 %s416_s9, 4  ;;  %p345_p0 = scmp.ne.s32.totalorder %s503_s0, %s344_s13  ;;  %s16_s10 = int_to_ptr.vmem [resolvable:$true] %s15_s10 }
   0x4   :  { %p348_p1 = scmp.lt.u32.totalorder %s344_s13, %s503_s0 }
   0x6   :  { %p350_p2 = pnand %p348_p1, %p345_p0 }
   0x8   :  { %353 = shalt.err (!%p350_p2)
}
   0x9   :  { %s354_s18 = scalar_lea.vmem %s16_s10, 1920  ;;  %p359_p4 = scmp.lt.s32.totalorder %s16_s10, %s16_s10 }
   0xa   :  { %p355_p3 = scmp.ne.s32.totalorder %s16_s10, %s354_s18  ;;  %p360_p5 = scmp.lt.s32.totalorder %s354_s18, %s354_s18 }
   0xc   :  { %p361_p6 = por %p360_p5, %p359_p4 }
   0xe   :  { %p362_p7 = pnand %p361_p6, %p355_p3 }
  0x10   :  { %365 = shalt.err (!%p362_p7)
}
  0x11   :  { %s417_s19 = smov 128   ;;  %s418_s20 = smov 8  }
  0x12   :  { %21 = dma.hbm_to_vmem [thread:$0]  %s503_s0, 1920, %s16_s10, [#allocation3], %s417_s19, %s417_s19, %s418_s20  }
  0x13   :  { %s419_s23 = smov [#allocation5]   ;;  %s366_s27 = scalar_lea.hbm %s504_s1, 1408 }
  0x14   :  { %s27_s24 = sshll.u32 %s419_s23, 4  ;;  %p367_p8 = scmp.ne.s32.totalorder %s504_s1, %s366_s27  ;;  %s28_s24 = int_to_ptr.vmem [resolvable:$true] %s27_s24 }
  0x15   :  { %p370_p9 = scmp.lt.u32.totalorder %s366_s27, %s504_s1 }
  0x17   :  { %p372_p10 = pnand %p370_p9, %p367_p8 }
  0x19   :  { %375 = shalt.err (!%p372_p10)
}
  0x1a   :  { %s376_s4 = scalar_lea.vmem %s28_s24, 1408  ;;  %p381_p12 = scmp.lt.s32.totalorder %s28_s24, %s28_s24 }
  0x1b   :  { %p377_p11 = scmp.ne.s32.totalorder %s28_s24, %s376_s4  ;;  %p382_p13 = scmp.lt.s32.totalorder %s376_s4, %s376_s4 }
  0x1d   :  { %p383_p0 = por %p382_p13, %p381_p12 }
  0x1f   :  { %p384_p1 = pnand %p383_p0, %p377_p11 }
  0x21   :  { %387 = shalt.err (!%p384_p1)
}
  0x22   :  { %33 = dma.hbm_to_vmem [thread:$0]  %s504_s1, 1408, %s28_s24, [#allocation6], %s417_s19, %s417_s19, %s418_s20  }
  0x23   :  { %410 = dma.done.wait [#allocation3], 1920  }
  0x24   :  { %411 = vsyncadd [#allocation3], 4294965376 }
  0x25   :  { %412 = dma.done.wait [#allocation6], 1408  }
  0x26   :  { %413 = vsyncadd [#allocation6], 4294965888  ;;  %v40_v0 = vld [vmem:[#allocation2] sm:$0xff]  ;;  %v66_v2 = vld [vmem:[#allocation2 + $0x68] sm:$0xff]  ;;  %s420_s1 = smov [#allocation7]  }
  0x27   :  { %v64_v1 = vld [vmem:[#allocation2 + $0x60] sm:$0xff]  ;;  %v116_v3 = vadd.f32 1.0, %v40_v0  ;;  %v123_v4 = vsub.f32 1.0, %v40_v0  ;;  %v68_v5 = vld [vmem:[#allocation2 + $0x70] sm:$0xff]  ;;  %v69_v6 = vld [vmem:[#allocation5] sm:$0xff]  ;;  %s316_s6 = sshll.u32 %s420_s1, 4  ;;  %s317_s6 = int_to_ptr.vmem [resolvable:$true] %s316_s6 }
  0x28   :  { %v71_v7 = vld [vmem:[#allocation5 + $0x8] sm:$0xff]  ;;  %v73_v8 = vld [vmem:[#allocation5 + $0x10] sm:$0xff]  ;;  %v90_v9 = vadd.f32 %v69_v6, %v64_v1  ;;  %v44_v18 = vld [vmem:[#allocation2 + $0x10] sm:$0xff]  ;;  %s388_s7 = scalar_lea.vmem %s317_s6, 2176  ;;  %p393_p3 = scmp.lt.s32.totalorder %s317_s6, %s317_s6 }
  0x29   :  { %v91_v10 = vadd.f32 %v71_v7, %v66_v2  ;;  %v50_v11 = vld [vmem:[#allocation2 + $0x28] sm:$0xff]  ;;  %v92_v13 = vadd.f32 %v73_v8, %v68_v5  ;;  %v48_v14 = vld [vmem:[#allocation2 + $0x20] sm:$0xff]  ;;  %v52_v21 = vld [vmem:[#allocation2 + $0x30] sm:$0xff]  ;;  %p389_p2 = scmp.ne.s32.totalorder %s317_s6, %s388_s7  ;;  %p394_p4 = scmp.lt.s32.totalorder %s388_s7, %s388_s7 }
  0x2a   :  { %v42_v12 = vld [vmem:[#allocation2 + $0x8] sm:$0xff]  ;;  %v117_v15 = vadd.f32 %v116_v3, %v50_v11  ;;  %v120_v16 = vsub.f32 %v116_v3, %v50_v11  ;;  %v124_v17 = vadd.f32 %v123_v4, %v50_v11  ;;  %v93_v19 = vmul.f32 %v90_v9, %v40_v0  ;;  %v60_v24 = vld [vmem:[#allocation2 + $0x50] sm:$0xff]  ;;  %v56_v28 = vld [vmem:[#allocation2 + $0x40] sm:$0xff] }
  0x2b   :  { %v94_v20 = vmul.f32 %v91_v10, %v42_v12  ;;  %v100_v22 = vmul.f32 %v90_v9, %v48_v14  ;;  %v101_v23 = vmul.f32 %v91_v10, %v50_v11  ;;  %v96_v25 = vmul.f32 %v92_v13, %v44_v18  ;;  %v58_v31 = vld [vmem:[#allocation2 + $0x48] sm:$0xff]  ;;  %v46_v33 = vld [vmem:[#allocation2 + $0x18] sm:$0xff]  ;;  %v75_v46 = vld [vmem:[#allocation5 + $0x18] sm:$0xff]  ;;  %p395_p5 = por %p394_p4, %p393_p3 }
  0x2c   :  { %v103_v26 = vmul.f32 %v92_v13, %v52_v21  ;;  %v127_v27 = vsub.f32 %v123_v4, %v50_v11  ;;  %v108_v32 = vmul.f32 %v90_v9, %v56_v28  ;;  %v54_v34 = vld [vmem:[#allocation2 + $0x38] sm:$0xff]  ;;  %v109_v35 = vmul.f32 %v91_v10, %v58_v31  ;;  %v79_v53 = vld [vmem:[#allocation5 + $0x28] sm:$0xff]  ;;  %v81_v4 = vld [vmem:[#allocation5 + $0x30] sm:$0xff] }
  0x2d   :  { %v95_v29 = vadd.f32 %v94_v20, %v93_v19  ;;  %v102_v30 = vadd.f32 %v101_v23, %v100_v22  ;;  %v111_v36 = vmul.f32 %v92_v13, %v60_v24  ;;  %v118_v37 = vadd.f32 %v117_v15, %v60_v24  ;;  %v77_v47 = vld [vmem:[#allocation5 + $0x20] sm:$0xff]  ;;  %v89_v5 = vld [vmem:[#allocation5 + $0x50] sm:$0xff]  ;;  %v83_v6 = vld [vmem:[#allocation5 + $0x38] sm:$0xff]  ;;  %p396_p6 = pnand %p395_p5, %p389_p2 }
  0x2e   :  { %v121_v38 = vsub.f32 %v120_v16, %v60_v24  ;;  %v125_v41 = vsub.f32 %v124_v17, %v60_v24  ;;  %v128_v42 = vadd.f32 %v127_v27, %v60_v24  ;;  %v110_v43 = vadd.f32 %v109_v35, %v108_v32  ;;  %v62_v50 = vld [vmem:[#allocation2 + $0x58] sm:$0xff]  ;;  %v87_v8 = vld [vmem:[#allocation5 + $0x48] sm:$0xff] }
  0x2f   :  { %v97_v39 = vadd.f32 %v96_v25, %v95_v29  ;;  %v104_v40 = vadd.f32 %v103_v26, %v102_v30  ;;  %v119_v44 = vmax.f32 %v118_v37, 0.0  ;;  %v138_v54 = vsub.f32 %v48_v14, %v42_v12  ;;  %v85_v7 = vld [vmem:[#allocation5 + $0x40] sm:$0xff] }
  0x30   :  { %v122_v45 = vmax.f32 %v121_v38, 0.0  ;;  %v126_v51 = vmax.f32 %v125_v41, 0.0  ;;  %v129_v52 = vmax.f32 %v128_v42, 0.0  ;;  %v142_v55 = vadd.f32 %v48_v14, %v42_v12 }
  0x31   :  { %v98_v48 = vadd.f32 %v97_v39, %v46_v33  ;;  %v105_v49 = vadd.f32 %v104_v40, %v54_v34  ;;  %v112_v56 = vadd.f32 %v111_v36, %v110_v43  ;;  %v137_v59 = vsub.f32 %v44_v18, %v56_v28 }
  0x32   :  { %v130_v57 = vmax.f32 %v119_v44, %v122_v45  ;;  %v131_v58 = vmax.f32 %v126_v51, %v129_v52  ;;  %v212_v60 = vmul.f32 1.442695, %v75_v46  ;;  %v214_v61 = vmul.f32 1.442695, %v77_v47 }
  0x33   :  { %99 = vst [vmem:[#allocation7] sm:$0xff] %v98_v48  ;;  %107 = vst [vmem:[#allocation7 + $0x8] sm:$0xff] %v105_v49  ;;  %v113_v62 = vadd.f32 %v112_v56, %v62_v50  ;;  %v143_v63 = vadd.f32 %v56_v28, %v44_v18  ;;  %v147_v0 = vadd.f32 %v58_v31, %v52_v21  ;;  %v216_v1 = vmul.f32 1.442695, %v79_v53 }
  0x34   :  { %v132_v2 = vmax.f32 %v130_v57, %v131_v58  ;;  %v136_v3 = vsub.f32 %v58_v31, %v52_v21  ;;  %334 = vpow2.f32 %v212_v60  ;;  %v224_v20 = vmul.f32 0.5, %v89_v5 }
  0x35   :  { %115 = vst [vmem:[#allocation7 + $0x10] sm:$0xff] %v113_v62  ;;  %336 = vpow2.f32 %v214_v61 }
  0x36   :  { %vm133_vm0 = vcmp.ge.f32.partialorder %v119_v44, %v132_v2  ;;  %vm134_vm1 = vcmp.ge.f32.partialorder %v122_v45, %v132_v2  ;;  %vm135_vm2 = vcmp.ge.f32.partialorder %v126_v51, %v132_v2  ;;  %338 = vpow2.f32 %v216_v1 }
  0x37   :  { %v139_v9 = vsel %vm135_vm2, %v137_v59, %v138_v54  ;;  %v144_v10 = vsel %vm135_vm2, %v142_v55, %v143_v63  ;;  %v148_v11 = vsel %vm135_vm2, %v126_v51, %v147_v0  ;;  %v151_v12 = vsel %vm135_vm2, %v147_v0, %v129_v52 }
  0x38   :  { %v140_v13 = vsel %vm134_vm1, %v136_v3, %v139_v9  ;;  %v145_v14 = vsel %vm134_vm1, %v122_v45, %v144_v10  ;;  %v149_v15 = vsel %vm134_vm1, %v142_v55, %v148_v11  ;;  %v152_v16 = vsel %vm134_vm1, %v143_v63, %v151_v12 }
  0x39   :  { %v141_v17 = vsel %vm133_vm0, %v119_v44, %v140_v13  ;;  %v146_v18 = vsel %vm133_vm0, %v136_v3, %v145_v14  ;;  %v150_v19 = vsel %vm133_vm0, %v137_v59, %v149_v15  ;;  %v153_v25 = vsel %vm133_vm0, %v138_v54, %v152_v16 }
  0x3a   :  { %v161_v21 = vmul.f32 %v141_v17, %v83_v6  ;;  %v162_v22 = vmul.f32 %v146_v18, %v81_v4  ;;  %v164_v23 = vmul.f32 %v150_v19, %v87_v8  ;;  %v168_v24 = vmul.f32 %v141_v17, %v85_v7 }
  0x3b   :  { %v169_v26 = vmul.f32 %v146_v18, %v87_v8  ;;  %v171_v27 = vmul.f32 %v150_v19, %v81_v4  ;;  %v175_v28 = vmul.f32 %v141_v17, %v87_v8  ;;  %v173_v30 = vmul.f32 %v153_v25, %v83_v6 }
  0x3c   :  { %v163_v29 = vadd.f32 %v162_v22, %v161_v21  ;;  %v176_v31 = vmul.f32 %v146_v18, %v85_v7  ;;  %v178_v32 = vmul.f32 %v150_v19, %v83_v6  ;;  %v154_v34 = vmul.f32 %v141_v17, %v81_v4 }
  0x3d   :  { %v170_v33 = vsub.f32 %v168_v24, %v169_v26  ;;  %v155_v35 = vmul.f32 %v146_v18, %v83_v6  ;;  %v157_v36 = vmul.f32 %v150_v19, %v85_v7  ;;  %v180_v39 = vmul.f32 %v153_v25, %v81_v4 }
  0x3e   :  { %v470_v37 = vpop.eup %334  ;;  %v177_v38 = vadd.f32 %v176_v31, %v175_v28  ;;  %v165_v40 = vadd.f32 %v164_v23, %v163_v29  ;;  %v166_v41 = vmul.f32 %v153_v25, %v85_v7  ;;  %v159_v45 = vmul.f32 %v153_v25, %v87_v8 }
  0x3f   :  { %v472_v42 = vpop.eup %336  ;;  %v172_v43 = vadd.f32 %v171_v27, %v170_v33  ;;  %v156_v44 = vsub.f32 %v154_v34, %v155_v35  ;;  %219 = vst [vmem:[#allocation7 + $0x38] sm:$0xff] %v470_v37  ;;  %340 = vtanh.f32 %v224_v20 }
  0x40   :  { %v475_v46 = vpop.eup %338  ;;  %v179_v47 = vsub.f32 %v177_v38, %v178_v32  ;;  %v167_v48 = vsub.f32 %v165_v40, %v166_v41  ;;  %221 = vst [vmem:[#allocation7 + $0x40] sm:$0xff] %v472_v42 }
  0x41   :  { %v158_v49 = vsub.f32 %v156_v44, %v157_v36  ;;  %v174_v50 = vadd.f32 %v173_v30, %v172_v43  ;;  %223 = vst [vmem:[#allocation7 + $0x48] sm:$0xff] %v475_v46 }
  0x42   :  { %v181_v51 = vadd.f32 %v180_v39, %v179_v47  ;;  %v185_v52 = vsub.f32 0.0, %v167_v48 }
  0x43   :  { %v160_v53 = vsub.f32 %v158_v49, %v159_v45  ;;  %v187_v54 = vsub.f32 0.0, %v174_v50 }
  0x44   :  { %v189_v55 = vsub.f32 0.0, %v181_v51 }
  0x45   :  { %vm182_vm3 = vcmp.lt.f32.partialorder %v160_v53, 0.0  ;;  %v183_v56 = vsub.f32 0.0, %v160_v53 }
  0x46   :  { %v186_v57 = vsel %vm182_vm3, %v185_v52, %v167_v48  ;;  %v188_v58 = vsel %vm182_vm3, %v187_v54, %v174_v50  ;;  %v190_v60 = vsel %vm182_vm3, %v189_v55, %v181_v51 }
  0x47   :  { %v184_v59 = vsel %vm182_vm3, %v183_v56, %v160_v53  ;;  %v192_v61 = vmul.f32 %v186_v57, %v186_v57  ;;  %v194_v63 = vmul.f32 %v188_v58, %v188_v58  ;;  %v196_v2 = vmul.f32 %v190_v60, %v190_v60 }
  0x48   :  { %v191_v62 = vmul.f32 %v184_v59, %v184_v59 }
  0x49   :  { %v341_v0 = vpop.eup %340 }
  0x4a   :  { %v193_v1 = vadd.f32 %v192_v61, %v191_v62  ;;  %v226_v3 = vadd.f32 1.0, %v341_v0 }
  0x4c   :  { %v195_v4 = vadd.f32 %v194_v63, %v193_v1  ;;  %v227_v5 = vmul.f32 0.5, %v226_v3 }
  0x4e   :  { %v197_v6 = vadd.f32 %v196_v2, %v195_v4  ;;  %229 = vst [vmem:[#allocation7 + $0x50] sm:$0xff] %v227_v5 }
  0x50   :  { %v198_v7 = vmax.f32 %v197_v6, 1e-24 }
  0x52   :  { %342 = vrsqrt.f32 %v198_v7 }
  0x5c   :  { %v343_v8 = vpop.eup %342 }
  0x5d   :  { %v200_v9 = vmul.f32 %v343_v8, %v184_v59  ;;  %v201_v10 = vmul.f32 %v343_v8, %v186_v57  ;;  %v202_v11 = vmul.f32 %v343_v8, %v188_v58  ;;  %v203_v12 = vmul.f32 %v343_v8, %v190_v60 }
  0x5f   :  { %205 = vst [vmem:[#allocation7 + $0x18] sm:$0xff] %v200_v9  ;;  %207 = vst [vmem:[#allocation7 + $0x20] sm:$0xff] %v201_v10  ;;  %v230_v13 = vmul.f32 %v202_v11, %v202_v11  ;;  %v231_v14 = vmul.f32 %v203_v12, %v203_v12  ;;  %v235_v15 = vmul.f32 %v202_v11, %v201_v10 }
  0x60   :  { %209 = vst [vmem:[#allocation7 + $0x28] sm:$0xff] %v202_v11  ;;  %211 = vst [vmem:[#allocation7 + $0x30] sm:$0xff] %v203_v12  ;;  %v236_v16 = vmul.f32 %v203_v12, %v200_v9  ;;  %v239_v17 = vmul.f32 %v203_v12, %v201_v10  ;;  %v240_v18 = vmul.f32 %v202_v11, %v200_v9 }
  0x61   :  { %v245_v19 = vmul.f32 %v201_v10, %v201_v10  ;;  %v249_v20 = vmul.f32 %v203_v12, %v202_v11  ;;  %v232_v21 = vadd.f32 %v231_v14, %v230_v13  ;;  %v250_v24 = vmul.f32 %v201_v10, %v200_v9 }
  0x62   :  { %v237_v22 = vsub.f32 %v235_v15, %v236_v16  ;;  %v243_v23 = vadd.f32 %v236_v16, %v235_v15  ;;  %v241_v25 = vadd.f32 %v240_v18, %v239_v17  ;;  %v253_v27 = vsub.f32 %v239_v17, %v240_v18 }
  0x63   :  { %v246_v26 = vadd.f32 %v245_v19, %v231_v14  ;;  %v257_v28 = vadd.f32 %v245_v19, %v230_v13  ;;  %v233_v29 = vmul.f32 2.0, %v232_v21  ;;  %v251_v32 = vsub.f32 %v249_v20, %v250_v24 }
  0x64   :  { %v238_v30 = vmul.f32 2.0, %v237_v22  ;;  %v244_v31 = vmul.f32 2.0, %v243_v23  ;;  %v242_v33 = vmul.f32 2.0, %v241_v25  ;;  %v254_v35 = vmul.f32 2.0, %v253_v27 }
  0x65   :  { %v247_v34 = vmul.f32 2.0, %v246_v26  ;;  %v255_v36 = vadd.f32 %v250_v24, %v249_v20  ;;  %v234_v38 = vsub.f32 1.0, %v233_v29  ;;  %v252_v40 = vmul.f32 2.0, %v251_v32 }
  0x66   :  { %v261_v39 = vmul.f32 %v472_v42, %v238_v30  ;;  %v263_v41 = vmul.f32 %v470_v37, %v244_v31  ;;  %v262_v43 = vmul.f32 %v475_v46, %v242_v33  ;;  %v258_v47 = vmul.f32 2.0, %v257_v28 }
  0x67   :  { %v248_v44 = vsub.f32 1.0, %v247_v34  ;;  %v256_v45 = vmul.f32 2.0, %v255_v36  ;;  %v260_v48 = vmul.f32 %v470_v37, %v234_v38  ;;  %v265_v50 = vmul.f32 %v475_v46, %v252_v40 }
  0x68   :  { %v270_v49 = vmul.f32 %v261_v39, %v261_v39  ;;  %v266_v51 = vmul.f32 %v470_v37, %v254_v35  ;;  %v272_v52 = vmul.f32 %v262_v43, %v262_v43  ;;  %v259_v54 = vsub.f32 1.0, %v258_v47 }
  0x69   :  { %v264_v53 = vmul.f32 %v472_v42, %v248_v44  ;;  %v267_v55 = vmul.f32 %v472_v42, %v256_v45  ;;  %v269_v56 = vmul.f32 %v260_v48, %v260_v48  ;;  %v276_v57 = vmul.f32 %v263_v41, %v260_v48 }
  0x6a   :  { %v279_v58 = vmul.f32 %v265_v50, %v262_v43  ;;  %v283_v59 = vmul.f32 %v266_v51, %v260_v48  ;;  %v268_v61 = vmul.f32 %v475_v46, %v259_v54  ;;  %v290_v63 = vmul.f32 %v263_v41, %v263_v41 }
  0x6b   :  { %v277_v60 = vmul.f32 %v264_v53, %v261_v39  ;;  %v284_v62 = vmul.f32 %v267_v55, %v261_v39  ;;  %v271_v0 = vadd.f32 %v270_v49, %v269_v56  ;;  %v291_v1 = vmul.f32 %v264_v53, %v264_v53 }
  0x6c   :  { %v293_v2 = vmul.f32 %v265_v50, %v265_v50  ;;  %v297_v3 = vmul.f32 %v266_v51, %v263_v41  ;;  %v286_v5 = vmul.f32 %v268_v61, %v262_v43  ;;  %v298_v6 = vmul.f32 %v267_v55, %v264_v53 }
  0x6d   :  { %v278_v37 = vadd.f32 %v277_v60, %v276_v57  ;;  %v285_v4 = vadd.f32 %v284_v62, %v283_v59  ;;  %v273_v7 = vadd.f32 %v272_v52, %v271_v0  ;;  %v292_v8 = vadd.f32 %v291_v1, %v290_v63 }
  0x6e   :  { %v300_v42 = vmul.f32 %v268_v61, %v265_v50  ;;  %v304_v9 = vmul.f32 %v266_v51, %v266_v51  ;;  %v299_v12 = vadd.f32 %v298_v6, %v297_v3  ;;  %v305_v13 = vmul.f32 %v267_v55, %v267_v55 }
  0x6f   :  { %v280_v10 = vadd.f32 %v279_v58, %v278_v37  ;;  %v287_v11 = vadd.f32 %v286_v5, %v285_v4  ;;  %275 = vst [vmem:[#allocation7 + $0x58] sm:$0xff] %v273_v7  ;;  %v294_v46 = vadd.f32 %v293_v2, %v292_v8  ;;  %v307_v14 = vmul.f32 %v268_v61, %v268_v61 }
  0x70   :  { %v301_v15 = vadd.f32 %v300_v42, %v299_v12  ;;  %v306_v16 = vadd.f32 %v305_v13, %v304_v9 }
  0x71   :  { %282 = vst [vmem:[#allocation7 + $0x60] sm:$0xff] %v280_v10  ;;  %289 = vst [vmem:[#allocation7 + $0x68] sm:$0xff] %v287_v11 }
  0x72   :  { %296 = vst [vmem:[#allocation7 + $0x70] sm:$0xff] %v294_v46  ;;  %303 = vst [vmem:[#allocation7 + $0x78] sm:$0xff] %v301_v15  ;;  %v308_v17 = vadd.f32 %v307_v14, %v306_v16 }
  0x74   :  { %310 = vst [vmem:[#allocation7 + $0x80] sm:$0xff] %v308_v17 }
  0x75   :  { %399 = shalt.err (!%p396_p6)
}
  0x76   :  { %s400_s10 = scalar_lea.hbm %s505_s2, 2176 }
  0x77   :  { %p401_p7 = scmp.ne.s32.totalorder %s505_s2, %s400_s10  ;;  %p404_p8 = scmp.lt.u32.totalorder %s400_s10, %s505_s2 }
  0x79   :  { %p406_p9 = pnand %p404_p8, %p401_p7 }
  0x7b   :  { %409 = shalt.err (!%p406_p9)
}
  0x7c   :  { %322 = dma.vmem_to_hbm [thread:$0]  %s317_s6, 2176, %s505_s2, [#allocation4], %s417_s19, %s417_s19, %s418_s20  }
  0x7d   :  { %414 = dma.done.wait [#allocation4], 2176  }
  0x7e   :  { %415 = vsyncadd [#allocation4], 4294965120 }
  0x7f   :  { %326 = vsyncpa [#allocation3], 1 }
  0x80   :  { %327 = vsyncpa [#allocation6], 1 }
  0x81   :  { %328 = vsyncpa [#allocation4], 1 }

</bundles_post_ra>
